<compile_context>
chip_gen: v5e
topology: v5e:2x2
jax: 0.10.0
libtpu: 0.0.40
codegen_flags: <defaults>
</compile_context>

<pallas_src>
import functools

import jax
import jax.numpy as jnp
from jax.experimental import pallas as pl
from jax.experimental.pallas import tpu as pltpu


def _ce_partial_kernel(logits_ref, targets_ref, out_ref, *, valid_rows):
    # logits_ref / targets_ref: (TB, C) tile in VMEM. out_ref: (1, 1) SMEM slot.
    x = logits_ref[...].astype(jnp.float32)
    t = targets_ref[...].astype(jnp.float32)

    # Numerically stable row-wise logsumexp over the class axis (axis=1).
    m = jnp.max(x, axis=1, keepdims=True)                              # (TB, 1)
    shifted = x - m                                                    # (TB, C)
    lse = jnp.log(jnp.sum(jnp.exp(shifted), axis=1, keepdims=True))    # (TB, 1)

    # sum_c [-t * log_softmax(x)] = sum_c(t) * lse - sum_c(t * shifted)
    # -> no (TB, C) log_probs / loss temporaries are materialized.
    t_sum = jnp.sum(t, axis=1, keepdims=True)                          # (TB, 1)
    t_dot = jnp.sum(t * shifted, axis=1, keepdims=True)                # (TB, 1)

    per_row = t_sum * lse - t_dot                                      # (TB, 1)

    if valid_rows is not None:
        # Last tile may extend past B: mask out-of-bounds (garbage) rows.
        tb = logits_ref.shape[0]
        row_ids = (pl.program_id(0) * tb
                   + jax.lax.broadcasted_iota(jnp.int32, (tb, 1), 0))
        per_row = jnp.where(row_ids < valid_rows, per_row, 0.0)

    # Per-tile partial sum -> scalar slot (final reduce happens in the wrapper).
    out_ref[0, 0] = jnp.sum(per_row)


def _choose_tile_rows(n_rows, n_cols, in_itemsize):
    # Keep the per-tile VMEM working set (2 inputs x 2 pipeline buffers plus
    # ~4 f32 temporaries per element) well inside the scoped VMEM limit on all
    # generations (v7x has only 64 MiB physical VMEM per TensorCore).
    budget_bytes = 28 * 1024 * 1024
    per_row_bytes = n_cols * (2 * 2 * in_itemsize + 4 * 4)
    tb = budget_bytes // max(per_row_bytes, 1)
    tb = max(8, min(512, (tb // 8) * 8))        # multiple of 8 sublanes
    padded_rows = ((n_rows + 7) // 8) * 8
    return min(tb, padded_rows)


def cross_entropy_with_logits_loss(model_output, noisy_targets):
    """model_output, noisy_targets: (B, C) arrays (softmax over axis 1).

    Returns scalar f32 loss = mean over all B*C elements of
    -(noisy_targets * log_softmax(model_output, axis=1)).
    """
    assert model_output.shape == noisy_targets.shape
    B, C = model_output.shape

    tb = _choose_tile_rows(B, C, jnp.dtype(model_output.dtype).itemsize)
    num_tiles = pl.cdiv(B, tb)
    needs_mask = (num_tiles * tb) != B

    kernel = functools.partial(
        _ce_partial_kernel, valid_rows=B if needs_mask else None)

    # TODO(synk): for vocab-sized C (>= ~32k) add a second 'arbitrary' grid
    # axis over C with an online logsumexp; full rows fit VMEM here.
    partials = pl.pallas_call(
        kernel,
        out_shape=jax.ShapeDtypeStruct((num_tiles, 1), jnp.float32),
        grid=(num_tiles,),
        in_specs=[
            pl.BlockSpec((tb, C), lambda i: (i, 0)),
            pl.BlockSpec((tb, C), lambda i: (i, 0)),
        ],
        out_specs=pl.BlockSpec((1, 1), lambda i: (i, 0),
                               memory_space=pltpu.SMEM),
        compiler_params=pltpu.CompilerParams(
            dimension_semantics=("parallel",),     # shard tiles across TCs
            vmem_limit_bytes=48 * 1024 * 1024,
        ),
    )(model_output, noisy_targets)

    # Tiny final reduction + mean over all B*C elements (matches torch.mean).
    return jnp.sum(partials) / jnp.float32(B * C)


def _reference(model_output, noisy_targets):
    lp = jax.nn.log_softmax(model_output.astype(jnp.float32), axis=1)
    return jnp.mean(-(noisy_targets.astype(jnp.float32) * lp))


if __name__ == "__main__":
    key = jax.random.PRNGKey(0)
    k1, k2 = jax.random.split(key)

    B, C = 8, 32  # batch, num classes (softmax axis = 1)

    # Unnormalized logits from a "model".
    model_output = jax.random.normal(k1, (B, C), dtype=jnp.float32)

    # Noisy (label-smoothed) target probabilities: e / (1 - e) style.
    eps = 0.05
    labels = jax.random.randint(k2, (B,), 0, C)
    one_hot = jax.nn.one_hot(labels, C, dtype=jnp.float32)
    noisy_targets = one_hot * (1.0 - eps) + (1.0 - one_hot) * (eps / (C - 1))

    loss = cross_entropy_with_logits_loss(model_output, noisy_targets)
    loss = jax.block_until_ready(loss)

    ref = _reference(model_output, noisy_targets)
    assert jnp.allclose(loss, ref, rtol=1e-5, atol=1e-6), (loss, ref)

    print("KERNEL_OK")
</pallas_src>

<mosaic_0001>
module attributes {stable_mosaic.version = 11 : i64} {
  func.func @_ce_partial_kernel(%arg0: i32, %arg1: memref<8x32xf32, #tpu.memory_space<vmem>>, %arg2: memref<8x32xf32, #tpu.memory_space<vmem>>, %arg3: memref<1x1xf32, #tpu.memory_space<smem>>) attributes {dimension_semantics = [#tpu.dimension_semantics<parallel>], iteration_bounds = array<i64: 1>, scalar_prefetch = 0 : i64, scratch_operands = 0 : i64, tpu.core_type = #tpu.core_type<tc>, window_params = [{transform_indices = @transform_0, window_bounds = array<i64: 8, 32>}, {transform_indices = @transform_1, window_bounds = array<i64: 8, 32>}, {transform_indices = @transform_2, window_bounds = array<i64: 1, 1>}]} {
    %c0 = arith.constant 0 : index
    %c0_0 = arith.constant 0 : index
    %0 = vector.load %arg1[%c0, %c0_0] : memref<8x32xf32, #tpu.memory_space<vmem>>, vector<8x32xf32>
    %c0_1 = arith.constant 0 : index
    %c0_2 = arith.constant 0 : index
    %1 = vector.load %arg2[%c0_1, %c0_2] : memref<8x32xf32, #tpu.memory_space<vmem>>, vector<8x32xf32>
    %cst = arith.constant dense<0xFF800000> : vector<8xf32>
    %2 = vector.multi_reduction <maximumf>, %0, %cst [1] : vector<8x32xf32> to vector<8xf32>
    %3 = vector.shape_cast %2 : vector<8xf32> to vector<8x1xf32>
    %4 = vector.broadcast %3 : vector<8x1xf32> to vector<8x32xf32>
    %5 = arith.subf %0, %4 : vector<8x32xf32>
    %6 = math.exp %5 : vector<8x32xf32>
    %cst_3 = arith.constant dense<0.000000e+00> : vector<8xf32>
    %7 = vector.multi_reduction <add>, %6, %cst_3 [1] : vector<8x32xf32> to vector<8xf32>
    %8 = vector.shape_cast %7 : vector<8xf32> to vector<8x1xf32>
    %9 = math.log %8 : vector<8x1xf32>
    %cst_4 = arith.constant dense<0.000000e+00> : vector<8xf32>
    %10 = vector.multi_reduction <add>, %1, %cst_4 [1] : vector<8x32xf32> to vector<8xf32>
    %11 = vector.shape_cast %10 : vector<8xf32> to vector<8x1xf32>
    %12 = arith.mulf %1, %5 : vector<8x32xf32>
    %cst_5 = arith.constant dense<0.000000e+00> : vector<8xf32>
    %13 = vector.multi_reduction <add>, %12, %cst_5 [1] : vector<8x32xf32> to vector<8xf32>
    %14 = vector.shape_cast %13 : vector<8xf32> to vector<8x1xf32>
    %15 = arith.mulf %11, %9 : vector<8x1xf32>
    %16 = arith.subf %15, %14 : vector<8x1xf32>
    %17 = vector.shape_cast %16 : vector<8x1xf32> to vector<1x8x1xf32>
    %cst_6 = arith.constant dense<0.000000e+00> : vector<1xf32>
    %18 = vector.multi_reduction <add>, %17, %cst_6 [1, 2] : vector<1x8x1xf32> to vector<1xf32>
    %19 = vector.shape_cast %18 : vector<1xf32> to vector<1x1x1xf32>
    %20 = vector.extract %19[0, 0, 0] : f32 from vector<1x1x1xf32>
    %c0_7 = arith.constant 0 : index
    %c0_8 = arith.constant 0 : index
    %21 = memref.load %arg3[%c0_7, %c0_8] : memref<1x1xf32, #tpu.memory_space<smem>>
    memref.store %20, %arg3[%c0_7, %c0_8] : memref<1x1xf32, #tpu.memory_space<smem>>
    return
  }
  func.func @transform_0(%arg0: i32) -> (i32, i32) {
    %c0_i32 = arith.constant 0 : i32
    %c0_i32_0 = arith.constant 0 : i32
    return %arg0, %c0_i32 : i32, i32
  }
  func.func @transform_1(%arg0: i32) -> (i32, i32) {
    %c0_i32 = arith.constant 0 : i32
    %c0_i32_0 = arith.constant 0 : i32
    return %arg0, %c0_i32 : i32, i32
  }
  func.func @transform_2(%arg0: i32) -> (i32, i32) {
    %c0_i32 = arith.constant 0 : i32
    %c0_i32_0 = arith.constant 0 : i32
    return %arg0, %c0_i32 : i32, i32
  }
}

</mosaic_0001>

<bundles_post_ra>
// kernel: tpu_custom_call.1
= control target key start
LH: loop header
LB: loop body
LE: loop exit
PB: predicated region body
PF: predicated region fallthrough
CT: control target
= control target key end

     0   :  { %7 = vsyncpa [#allocation3], 0  ;;  %s195_s0 = inlined_call_operand.hbm [shape: f32[8,32], index: 0, kind: input, shape index: {}]   ;;  %s196_s1 = inlined_call_operand.hbm [shape: f32[8,32], index: 1, kind: input, shape index: {}]   ;;  %s197_s2 = inlined_call_operand.hbm [shape: f32[1,1], index: 2, kind: output, shape index: {}]  }
   0x1   :  { %8 = vsyncpa [#allocation6], 0 }
   0x2   :  { %9 = vsyncpa [#allocation4], 0  ;;  %s15_s11 = sshll.u32 %s195_s0, 4  ;;  %s168_s12 = smov [#allocation2]   ;;  %s16_s11 = int_to_ptr.hbm [resolvable:$true] %s15_s11 }
   0x3   :  { %s17_s13 = sshll.u32 %s168_s12, 4  ;;  %s26_s16 = sshll.u32 %s196_s1, 4  ;;  %s18_s13 = int_to_ptr.vmem [resolvable:$true] %s17_s13  ;;  %s27_s16 = int_to_ptr.hbm [resolvable:$true] %s26_s16 }
   0x4   :  { %20 = dma.hbm_to_vmem [thread:$0]  %s16_s11, 128, %s18_s13, [#allocation3]  }
   0x5   :  { %s169_s17 = smov [#allocation5]  }
   0x6   :  { %s28_s18 = sshll.u32 %s169_s17, 4  ;;  %s29_s18 = int_to_ptr.vmem [resolvable:$true] %s28_s18 }
   0x7   :  { %31 = dma.hbm_to_vmem [thread:$0]  %s27_s16, 128, %s29_s18, [#allocation6]  }
   0x8   :  { %162 = dma.done.wait [#allocation3], 128  }
   0x9   :  { %163 = vsyncadd [#allocation3], 4294967168 }
   0xa   :  { %164 = dma.done.wait [#allocation6], 128  }
   0xb   :  { %165 = vsyncadd [#allocation6], 4294967168  ;;  %vm42_vm0 = vcmask 261120   ;;  %v40_v0 = vld [vmem:[#allocation2] sm:$0xff]  ;;  %v41_v1 = vld [vmem:[#allocation5] sm:$0xff]  ;;  %vm63_vm1 = vcmask 7168  }
   0xc   :  { %v43_v2 = vsel %vm42_vm0, %v40_v0, -inf  ;;  %v54_v3 = vsel %vm42_vm0, %v41_v1, 0.0  ;;  %s81_s19 = sshll.u32 %s197_s2, 4  ;;  %s170_s21 = smov [#allocation7]   ;;  %s82_s19 = int_to_ptr.hbm [resolvable:$true] %s81_s19 }
   0xd   :  { %44 = vmax.xlane.f32.xlu0 %v43_v2  ;;  %55 = vadd.xlane.f32.xlu1 %v54_v3 }
  0x80   :  { %v45_v4 = vpop.xlane.xlu0 %44  ;;  %v56_v12 = vpop.xlane.xlu1 %55 }
  0x81   :  { %v46_v5 = vsub.f32 %v40_v0, %v45_v4 }
  0x83   :  { %v47_v6 = vmul.f32 1.442695, %v46_v5  ;;  %v57_v7 = vmul.f32 %v46_v5, %v41_v1 }
  0x85   :  { %98 = vpow2.f32 %v47_v6  ;;  %v58_v8 = vsel %vm42_vm0, %v57_v7, 0.0 }
  0x86   :  { %59 = vadd.xlane.f32.xlu1 %v58_v8 }
  0x8b   :  { %v99_v9 = vpop.eup %98 }
  0x8c   :  { %v49_v10 = vsel %vm42_vm0, %v99_v9, 0.0 }
  0x8d   :  { %50 = vadd.xlane.f32.xlu0 %v49_v10 }
  0xf9   :  { %v60_v16 = vpop.xlane.xlu1 %59 }
 0x100   :  { %v51_v11 = vpop.xlane.xlu0 %50 }
 0x101   :  { %100 = vlog2.f32 %v51_v11 }
 0x107   :  { %v101_v13 = vpop.eup %100 }
 0x108   :  { %v53_v14 = vmul.f32 0.6931472, %v101_v13 }
 0x10a   :  { %v61_v15 = vmul.f32 %v56_v12, %v53_v14 }
 0x10c   :  { %v62_v17 = vsub.f32 %v61_v15, %v60_v16 }
 0x10e   :  { %v64_v18 = vsel %vm63_vm1, %v62_v17, 0.0 }
 0x10f   :  { %65 = vadd.xlane.f32.xlu2 %v64_v18 }
 0x182   :  { %v66_v19 = vpop.xlane.xlu2 %65 }
 0x183   :  { %v67_v20 = vrot.slane %v66_v19, 4 }
 0x185   :  { %v68_v21 = vadd.f32 %v67_v20, %v66_v19 }
 0x187   :  { %v69_v22 = vrot.slane %v68_v21, 2 }
 0x189   :  { %v70_v23 = vadd.f32 %v69_v22, %v68_v21 }
 0x18b   :  { %v71_v24 = vrot.slane %v70_v23, 1 }
 0x18d   :  { %v72_v25 = vadd.f32 %v71_v24, %v70_v23 }
 0x18f   :  { %93 = vpush %v72_v25 }
 0x1c0   :  { %s94_s20 = spop %93 }
 0x1c1   :  { %75 = sst [smem:[#allocation7]] %s94_s20 }
 0x1c2   :  { %84 = dma.smem_to_hbm %s170_s21, 16, %s82_s19, [#allocation4]  }
 0x1c3   :  { %166 = dma.done.wait [#allocation4], 16  }
 0x1c4   :  { %167 = vsyncadd [#allocation4], 4294967280 }
 0x1c5   :  { %89 = sfence }
 0x1c6   :  { %90 = vsyncpa [#allocation3], 1 }
 0x1c7   :  { %91 = vsyncpa [#allocation6], 1 }
 0x1c8   :  { %92 = vsyncpa [#allocation4], 1 }

</bundles_post_ra>
